<compile_context>
chip_gen: v7x
topology: tpu7x:2x2x1
jax: 0.10.0
libtpu: 0.0.40
codegen_flags: <defaults>
</compile_context>

<pallas_src>
import functools

import jax
import jax.numpy as jnp
from jax import lax
from jax.experimental import pallas as pl
from jax.experimental.pallas import tpu as pltpu

_VMEM_LIMIT = 32 * 1024 * 1024      # explicit scoped-VMEM limit (safe on v5e/v6e/v7x)
_BLOCK_BUDGET = 2 * 1024 * 1024     # max bytes per (Nt, Ct, L) f32 data block


def _stats_kernel(xr_ref, xi_ref, par_ref, out_ref, acc_ref, *, inv_r, eps):
    """Accumulate per-channel sum / sum-of-squares over the row (N) grid axis,
    then fold gamma/beta into per-channel (scale, shift) on the last step."""
    n = pl.program_id(1)

    @pl.when(n == 0)
    def _init():
        acc_ref[...] = jnp.zeros_like(acc_ref)

    xr = xr_ref[...]                          # (Nt, Ct, L)
    xi = xi_ref[...]

    def _partial_sums(x):
        s = jnp.sum(x, axis=0)                # (Ct, L)   cheap VPU adds over Nt
        s2 = jnp.sum(x * x, axis=0)           # (Ct, L)
        return (jnp.sum(s, axis=1, keepdims=True),    # (Ct, 1)  XLU lane reduce
                jnp.sum(s2, axis=1, keepdims=True))

    sr, sr2 = _partial_sums(xr)
    si, si2 = _partial_sums(xi)
    acc_ref[...] += jnp.concatenate([sr, sr2, si, si2], axis=1)   # (Ct, 4)

    @pl.when(n == pl.num_programs(1) - 1)
    def _finalize():
        s = acc_ref[...]                      # (Ct, 4) [sum_r, sumsq_r, sum_i, sumsq_i]
        par = par_ref[...]                    # (Ct, 4) [gamma_r, beta_r, gamma_i, beta_i]

        def _affine(s_col, s2_col, g_col, b_col):
            mean = s_col * inv_r
            var = s2_col * inv_r - mean * mean          # biased variance
            inv_std = lax.rsqrt(var + eps)              # EUP
            scale = g_col * inv_std
            shift = b_col - mean * scale
            return scale, shift

        sc_r, sh_r = _affine(s[:, 0:1], s[:, 1:2], par[:, 0:1], par[:, 1:2])
        sc_i, sh_i = _affine(s[:, 2:3], s[:, 3:4], par[:, 2:3], par[:, 3:4])
        out_ref[...] = jnp.concatenate([sc_r, sh_r, sc_i, sh_i], axis=1)


def _norm_kernel(ss_ref, xr_ref, xi_ref, or_ref, oi_ref):
    """y = x * scale + shift for both planes; (Ct,1) broadcasts over (Nt,Ct,L)."""
    ss = ss_ref[...]                          # (Ct, 4) [scale_r, shift_r, scale_i, shift_i]
    or_ref[...] = (xr_ref[...] * ss[:, 0:1] + ss[:, 1:2]).astype(or_ref.dtype)
    oi_ref[...] = (xi_ref[...] * ss[:, 2:3] + ss[:, 3:4]).astype(oi_ref.dtype)


def _pick_channel_tile(C, L):
    """Largest multiple-of-8 divisor of C that fits the block budget; prefer
    >=2 channel tiles so the 'parallel' axis can feed both v7x TensorCores."""
    cands = [d for d in range(8, C + 1, 8) if C % d == 0] or [C]
    fitting = [d for d in cands if d * L * 4 <= _BLOCK_BUDGET]
    if not fitting:
        # TODO(synk): tile L as well for extremely long sequences.
        return min(cands)
    multi = [d for d in fitting if C // d >= 2]
    return max(multi) if multi else max(fitting)


def _pick_row_tile(N, Ct, L):
    """Largest divisor of N within the block budget, preferring >=4 grid steps
    along the (pipelined) row axis."""
    cands = [d for d in range(1, N + 1) if N % d == 0]
    fitting = [d for d in cands if d * Ct * L * 4 <= _BLOCK_BUDGET]
    if not fitting:
        return 1
    deep = [d for d in fitting if N // d >= 4]
    return max(deep) if deep else max(fitting)


def naive_complex_batchnorm1d(x, gamma_r, beta_r, gamma_i, beta_i, *, eps=1e-5):
    """x: complex64 of shape (N, C) or (N, C, L).  Params: float32 (C,).
    Returns complex64 of the same shape (training-mode forward)."""
    orig_ndim = x.ndim
    if orig_ndim == 2:
        x3 = x[:, :, None]                    # free trailing-unit reshape
    elif orig_ndim == 3:
        x3 = x
    else:
        raise ValueError("NaiveComplexBatchNorm1d expects (N, C) or (N, C, L)")

    N, C, L = x3.shape
    # TODO(synk): complex64 split/recombine (jnp.real/jnp.imag, lax.complex) is
    # done in the wrapper because Mosaic has no complex dtype; a bitcast-and-
    # de-interleave inside the kernel would save two more HBM passes.
    xr = jnp.real(x3).astype(jnp.float32)     # (N, C, L)
    xi = jnp.imag(x3).astype(jnp.float32)

    params = jnp.stack(
        [gamma_r, beta_r, gamma_i, beta_i], axis=-1).astype(jnp.float32)  # (C, 4)

    Ct = _pick_channel_tile(C, L)
    Nt = _pick_row_tile(N, Ct, L)
    c_tiles = C // Ct
    n_tiles = N // Nt

    x_spec = pl.BlockSpec((Nt, Ct, L), lambda c, n: (n, c, 0))
    cvec_spec = pl.BlockSpec((Ct, 4), lambda c, n: (c, 0))

    inv_r = 1.0 / float(N * L)

    # Pass 1: per-channel scale/shift, accumulated over the row axis.
    scale_shift = pl.pallas_call(
        functools.partial(_stats_kernel, inv_r=inv_r, eps=float(eps)),
        out_shape=jax.ShapeDtypeStruct((C, 4), jnp.float32),
        grid=(c_tiles, n_tiles),
        in_specs=[x_spec, x_spec, cvec_spec],
        out_specs=cvec_spec,
        scratch_shapes=[pltpu.VMEM((Ct, 4), jnp.float32)],
        compiler_params=pltpu.CompilerParams(
            dimension_semantics=("parallel", "arbitrary"),
            vmem_limit_bytes=_VMEM_LIMIT,
        ),
    )(xr, xi, params)

    # Pass 2: normalize both planes (pure mul+add per element).
    out_r, out_i = pl.pallas_call(
        _norm_kernel,
        out_shape=(jax.ShapeDtypeStruct((N, C, L), jnp.float32),
                   jax.ShapeDtypeStruct((N, C, L), jnp.float32)),
        grid=(c_tiles, n_tiles),
        in_specs=[cvec_spec, x_spec, x_spec],
        out_specs=(x_spec, x_spec),
        compiler_params=pltpu.CompilerParams(
            dimension_semantics=("parallel", "parallel"),
            vmem_limit_bytes=_VMEM_LIMIT,
        ),
    )(scale_shift, xr, xi)

    # TODO(synk): running_mean / running_var buffer updates (momentum,
    # track_running_stats) are training-time module-buffer side effects; they
    # do not affect the training-mode forward output and are not emitted.
    out = lax.complex(out_r, out_i)
    if orig_ndim == 2:
        out = out[:, :, 0]
    return out


def _reference_bn(x, gamma, beta, eps):
    # Pure-JAX BatchNorm1d training-mode forward on a real (N, C, L) tensor.
    mean = jnp.mean(x, axis=(0, 2), keepdims=True)
    var = jnp.mean((x - mean) ** 2, axis=(0, 2), keepdims=True)  # biased
    xhat = (x - mean) / jnp.sqrt(var + eps)
    return xhat * gamma[None, :, None] + beta[None, :, None]


if __name__ == "__main__":
    N, C, L = 8, 32, 16
    eps = 1e-5

    key = jax.random.PRNGKey(0)
    kxr, kxi, kgr, kbr, kgi, kbi = jax.random.split(key, 6)

    x_real = jax.random.normal(kxr, (N, C, L), dtype=jnp.float32)
    x_imag = jax.random.normal(kxi, (N, C, L), dtype=jnp.float32)
    x = lax.complex(x_real, x_imag)

    # Non-trivial affine parameters so the affine path is actually exercised
    # (PyTorch default init is ones/zeros).
    gamma_r = 1.0 + 0.1 * jax.random.normal(kgr, (C,), dtype=jnp.float32)
    beta_r = 0.1 * jax.random.normal(kbr, (C,), dtype=jnp.float32)
    gamma_i = 1.0 + 0.1 * jax.random.normal(kgi, (C,), dtype=jnp.float32)
    beta_i = 0.1 * jax.random.normal(kbi, (C,), dtype=jnp.float32)

    fn = jax.jit(functools.partial(naive_complex_batchnorm1d, eps=eps))
    out = fn(x, gamma_r, beta_r, gamma_i, beta_i)
    out = jax.block_until_ready(out)

    # Reference: BatchNorm1d independently on real and imaginary planes.
    ref_real = _reference_bn(x_real, gamma_r, beta_r, eps)
    ref_imag = _reference_bn(x_imag, gamma_i, beta_i, eps)

    assert out.shape == (N, C, L) and out.dtype == jnp.complex64
    assert jnp.allclose(jnp.real(out), ref_real, atol=1e-4, rtol=1e-4)
    assert jnp.allclose(jnp.imag(out), ref_imag, atol=1e-4, rtol=1e-4)

    print("KERNEL_OK")
</pallas_src>

<mosaic_0001>
module attributes {stable_mosaic.version = 11 : i64} {
  func.func @_norm_kernel(%arg0: i32, %arg1: i32, %arg2: memref<16x4xf32, #tpu.memory_space<vmem>>, %arg3: memref<2x16x16xf32, #tpu.memory_space<vmem>>, %arg4: memref<2x16x16xf32, #tpu.memory_space<vmem>>, %arg5: memref<2x16x16xf32, #tpu.memory_space<vmem>>, %arg6: memref<2x16x16xf32, #tpu.memory_space<vmem>>) attributes {dimension_semantics = [#tpu.dimension_semantics<parallel>, #tpu.dimension_semantics<parallel>], iteration_bounds = array<i64: 2, 4>, scalar_prefetch = 0 : i64, scratch_operands = 0 : i64, tpu.core_type = #tpu.core_type<tc>, window_params = [{transform_indices = @transform_0, window_bounds = array<i64: 16, 4>}, {transform_indices = @transform_1, window_bounds = array<i64: 2, 16, 16>}, {transform_indices = @transform_2, window_bounds = array<i64: 2, 16, 16>}, {transform_indices = @transform_3, window_bounds = array<i64: 2, 16, 16>}, {transform_indices = @transform_4, window_bounds = array<i64: 2, 16, 16>}]} {
    %c0 = arith.constant 0 : index
    %c0_0 = arith.constant 0 : index
    %0 = vector.load %arg2[%c0, %c0_0] : memref<16x4xf32, #tpu.memory_space<vmem>>, vector<16x4xf32>
    %c0_1 = arith.constant 0 : index
    %c0_2 = arith.constant 0 : index
    %c0_3 = arith.constant 0 : index
    %1 = vector.load %arg3[%c0_1, %c0_2, %c0_3] : memref<2x16x16xf32, #tpu.memory_space<vmem>>, vector<2x16x16xf32>
    %2 = vector.extract_strided_slice %0 {offsets = [0, 0], sizes = [16, 1], strides = [1, 1]} : vector<16x4xf32> to vector<16x1xf32>
    %3 = vector.shape_cast %2 : vector<16x1xf32> to vector<1x16x1xf32>
    %4 = vector.broadcast %3 : vector<1x16x1xf32> to vector<2x16x16xf32>
    %5 = arith.mulf %1, %4 : vector<2x16x16xf32>
    %6 = vector.extract_strided_slice %0 {offsets = [0, 1], sizes = [16, 1], strides = [1, 1]} : vector<16x4xf32> to vector<16x1xf32>
    %7 = vector.shape_cast %6 : vector<16x1xf32> to vector<1x16x1xf32>
    %8 = vector.broadcast %7 : vector<1x16x1xf32> to vector<2x16x16xf32>
    %9 = arith.addf %5, %8 : vector<2x16x16xf32>
    %c0_4 = arith.constant 0 : index
    %c0_5 = arith.constant 0 : index
    %c0_6 = arith.constant 0 : index
    %10 = vector.load %arg5[%c0_4, %c0_5, %c0_6] : memref<2x16x16xf32, #tpu.memory_space<vmem>>, vector<2x16x16xf32>
    tpu.vector_store %arg5[%c0_4, %c0_5, %c0_6], %9 {strides = array<i32>} : memref<2x16x16xf32, #tpu.memory_space<vmem>>, vector<2x16x16xf32>,
    %c0_7 = arith.constant 0 : index
    %c0_8 = arith.constant 0 : index
    %c0_9 = arith.constant 0 : index
    %11 = vector.load %arg4[%c0_7, %c0_8, %c0_9] : memref<2x16x16xf32, #tpu.memory_space<vmem>>, vector<2x16x16xf32>
    %12 = vector.extract_strided_slice %0 {offsets = [0, 2], sizes = [16, 1], strides = [1, 1]} : vector<16x4xf32> to vector<16x1xf32>
    %13 = vector.shape_cast %12 : vector<16x1xf32> to vector<1x16x1xf32>
    %14 = vector.broadcast %13 : vector<1x16x1xf32> to vector<2x16x16xf32>
    %15 = arith.mulf %11, %14 : vector<2x16x16xf32>
    %16 = vector.extract_strided_slice %0 {offsets = [0, 3], sizes = [16, 1], strides = [1, 1]} : vector<16x4xf32> to vector<16x1xf32>
    %17 = vector.shape_cast %16 : vector<16x1xf32> to vector<1x16x1xf32>
    %18 = vector.broadcast %17 : vector<1x16x1xf32> to vector<2x16x16xf32>
    %19 = arith.addf %15, %18 : vector<2x16x16xf32>
    %c0_10 = arith.constant 0 : index
    %c0_11 = arith.constant 0 : index
    %c0_12 = arith.constant 0 : index
    %20 = vector.load %arg6[%c0_10, %c0_11, %c0_12] : memref<2x16x16xf32, #tpu.memory_space<vmem>>, vector<2x16x16xf32>
    tpu.vector_store %arg6[%c0_10, %c0_11, %c0_12], %19 {strides = array<i32>} : memref<2x16x16xf32, #tpu.memory_space<vmem>>, vector<2x16x16xf32>,
    return
  }
  func.func @transform_0(%arg0: i32, %arg1: i32) -> (i32, i32) {
    %c0_i32 = arith.constant 0 : i32
    %c0_i32_0 = arith.constant 0 : i32
    return %arg0, %c0_i32 : i32, i32
  }
  func.func @transform_1(%arg0: i32, %arg1: i32) -> (i32, i32, i32) {
    %c0_i32 = arith.constant 0 : i32
    %c0_i32_0 = arith.constant 0 : i32
    return %arg1, %arg0, %c0_i32 : i32, i32, i32
  }
  func.func @transform_2(%arg0: i32, %arg1: i32) -> (i32, i32, i32) {
    %c0_i32 = arith.constant 0 : i32
    %c0_i32_0 = arith.constant 0 : i32
    return %arg1, %arg0, %c0_i32 : i32, i32, i32
  }
  func.func @transform_3(%arg0: i32, %arg1: i32) -> (i32, i32, i32) {
    %c0_i32 = arith.constant 0 : i32
    %c0_i32_0 = arith.constant 0 : i32
    return %arg1, %arg0, %c0_i32 : i32, i32, i32
  }
  func.func @transform_4(%arg0: i32, %arg1: i32) -> (i32, i32, i32) {
    %c0_i32 = arith.constant 0 : i32
    %c0_i32_0 = arith.constant 0 : i32
    return %arg1, %arg0, %c0_i32 : i32, i32, i32
  }
}

module attributes {stable_mosaic.version = 11 : i64} {
  func.func @_stats_kernel(%arg0: i32, %arg1: i32, %arg2: memref<2x16x16xf32, #tpu.memory_space<vmem>>, %arg3: memref<2x16x16xf32, #tpu.memory_space<vmem>>, %arg4: memref<16x4xf32, #tpu.memory_space<vmem>>, %arg5: memref<16x4xf32, #tpu.memory_space<vmem>>, %arg6: memref<16x4xf32, #tpu.memory_space<vmem>>) attributes {dimension_semantics = [#tpu.dimension_semantics<parallel>, #tpu.dimension_semantics<arbitrary>], iteration_bounds = array<i64: 2, 4>, scalar_prefetch = 0 : i64, scratch_operands = 1 : i64, tpu.core_type = #tpu.core_type<tc>, window_params = [{transform_indices = @transform_0, window_bounds = array<i64: 2, 16, 16>}, {transform_indices = @transform_1, window_bounds = array<i64: 2, 16, 16>}, {transform_indices = @transform_2, window_bounds = array<i64: 16, 4>}, {transform_indices = @transform_3, window_bounds = array<i64: 16, 4>}]} {
    %c0_i32 = arith.constant 0 : i32
    %0 = arith.cmpi eq, %arg1, %c0_i32 : i32
    %1 = arith.extui %0 : i1 to i32
    %c0_i32_0 = arith.constant 0 : i32
    %2 = arith.cmpi ne, %1, %c0_i32_0 : i32
    scf.if %2 {
      %cst_18 = arith.constant 0.000000e+00 : f32
      %26 = vector.broadcast %cst_18 : f32 to vector<16x4xf32>
      %c0_19 = arith.constant 0 : index
      %c0_20 = arith.constant 0 : index
      %27 = vector.load %arg6[%c0_19, %c0_20] : memref<16x4xf32, #tpu.memory_space<vmem>>, vector<16x4xf32>
      tpu.vector_store %arg6[%c0_19, %c0_20], %26 {strides = array<i32>} : memref<16x4xf32, #tpu.memory_space<vmem>>, vector<16x4xf32>,
    } else {
    }
    %c0 = arith.constant 0 : index
    %c0_1 = arith.constant 0 : index
    %c0_2 = arith.constant 0 : index
    %3 = vector.load %arg2[%c0, %c0_1, %c0_2] : memref<2x16x16xf32, #tpu.memory_space<vmem>>, vector<2x16x16xf32>
    %c0_3 = arith.constant 0 : index
    %c0_4 = arith.constant 0 : index
    %c0_5 = arith.constant 0 : index
    %4 = vector.load %arg3[%c0_3, %c0_4, %c0_5] : memref<2x16x16xf32, #tpu.memory_space<vmem>>, vector<2x16x16xf32>
    %cst = arith.constant dense<0.000000e+00> : vector<16x16xf32>
    %5 = vector.multi_reduction <add>, %3, %cst [0] : vector<2x16x16xf32> to vector<16x16xf32>
    %6 = arith.mulf %3, %3 : vector<2x16x16xf32>
    %cst_6 = arith.constant dense<0.000000e+00> : vector<16x16xf32>
    %7 = vector.multi_reduction <add>, %6, %cst_6 [0] : vector<2x16x16xf32> to vector<16x16xf32>
    %cst_7 = arith.constant dense<0.000000e+00> : vector<16xf32>
    %8 = vector.multi_reduction <add>, %5, %cst_7 [1] : vector<16x16xf32> to vector<16xf32>
    %9 = vector.shape_cast %8 : vector<16xf32> to vector<16x1xf32>
    %cst_8 = arith.constant dense<0.000000e+00> : vector<16xf32>
    %10 = vector.multi_reduction <add>, %7, %cst_8 [1] : vector<16x16xf32> to vector<16xf32>
    %11 = vector.shape_cast %10 : vector<16xf32> to vector<16x1xf32>
    %cst_9 = arith.constant dense<0.000000e+00> : vector<16x16xf32>
    %12 = vector.multi_reduction <add>, %4, %cst_9 [0] : vector<2x16x16xf32> to vector<16x16xf32>
    %13 = arith.mulf %4, %4 : vector<2x16x16xf32>
    %cst_10 = arith.constant dense<0.000000e+00> : vector<16x16xf32>
    %14 = vector.multi_reduction <add>, %13, %cst_10 [0] : vector<2x16x16xf32> to vector<16x16xf32>
    %cst_11 = arith.constant dense<0.000000e+00> : vector<16xf32>
    %15 = vector.multi_reduction <add>, %12, %cst_11 [1] : vector<16x16xf32> to vector<16xf32>
    %16 = vector.shape_cast %15 : vector<16xf32> to vector<16x1xf32>
    %cst_12 = arith.constant dense<0.000000e+00> : vector<16xf32>
    %17 = vector.multi_reduction <add>, %14, %cst_12 [1] : vector<16x16xf32> to vector<16xf32>
    %18 = vector.shape_cast %17 : vector<16xf32> to vector<16x1xf32>
    %c0_13 = arith.constant 0 : index
    %c0_14 = arith.constant 0 : index
    %19 = vector.load %arg6[%c0_13, %c0_14] : memref<16x4xf32, #tpu.memory_space<vmem>>, vector<16x4xf32>
    %20 = tpu.concatenate %9, %11, %16, %18 in 1 : vector<16x1xf32>, vector<16x1xf32>, vector<16x1xf32>, vector<16x1xf32> -> vector<16x4xf32>
    %21 = arith.addf %19, %20 : vector<16x4xf32>
    %c0_15 = arith.constant 0 : index
    %c0_16 = arith.constant 0 : index
    %22 = vector.load %arg6[%c0_15, %c0_16] : memref<16x4xf32, #tpu.memory_space<vmem>>, vector<16x4xf32>
    tpu.vector_store %arg6[%c0_15, %c0_16], %21 {strides = array<i32>} : memref<16x4xf32, #tpu.memory_space<vmem>>, vector<16x4xf32>,
    %c3_i32 = arith.constant 3 : i32
    %23 = arith.cmpi eq, %arg1, %c3_i32 : i32
    %24 = arith.extui %23 : i1 to i32
    %c0_i32_17 = arith.constant 0 : i32
    %25 = arith.cmpi ne, %24, %c0_i32_17 : i32
    scf.if %25 {
      %c0_18 = arith.constant 0 : index
      %c0_19 = arith.constant 0 : index
      %26 = vector.load %arg6[%c0_18, %c0_19] : memref<16x4xf32, #tpu.memory_space<vmem>>, vector<16x4xf32>
      %c0_20 = arith.constant 0 : index
      %c0_21 = arith.constant 0 : index
      %27 = vector.load %arg4[%c0_20, %c0_21] : memref<16x4xf32, #tpu.memory_space<vmem>>, vector<16x4xf32>
      %28 = vector.extract_strided_slice %26 {offsets = [0, 0], sizes = [16, 1], strides = [1, 1]} : vector<16x4xf32> to vector<16x1xf32>
      %29 = vector.extract_strided_slice %26 {offsets = [0, 1], sizes = [16, 1], strides = [1, 1]} : vector<16x4xf32> to vector<16x1xf32>
      %30 = vector.extract_strided_slice %27 {offsets = [0, 0], sizes = [16, 1], strides = [1, 1]} : vector<16x4xf32> to vector<16x1xf32>
      %31 = vector.extract_strided_slice %27 {offsets = [0, 1], sizes = [16, 1], strides = [1, 1]} : vector<16x4xf32> to vector<16x1xf32>
      %cst_22 = arith.constant 7.812500e-03 : f32
      %32 = vector.broadcast %cst_22 : f32 to vector<16x1xf32>
      %33 = arith.mulf %28, %32 : vector<16x1xf32>
      %cst_23 = arith.constant 7.812500e-03 : f32
      %34 = vector.broadcast %cst_23 : f32 to vector<16x1xf32>
      %35 = arith.mulf %29, %34 : vector<16x1xf32>
      %36 = arith.mulf %33, %33 : vector<16x1xf32>
      %37 = arith.subf %35, %36 : vector<16x1xf32>
      %cst_24 = arith.constant 9.99999974E-6 : f32
      %38 = vector.broadcast %cst_24 : f32 to vector<16x1xf32>
      %39 = arith.addf %37, %38 : vector<16x1xf32>
      %40 = math.rsqrt %39 : vector<16x1xf32>
      %41 = arith.mulf %30, %40 : vector<16x1xf32>
      %42 = arith.mulf %33, %41 : vector<16x1xf32>
      %43 = arith.subf %31, %42 : vector<16x1xf32>
      %44 = vector.extract_strided_slice %26 {offsets = [0, 2], sizes = [16, 1], strides = [1, 1]} : vector<16x4xf32> to vector<16x1xf32>
      %45 = vector.extract_strided_slice %26 {offsets = [0, 3], sizes = [16, 1], strides = [1, 1]} : vector<16x4xf32> to vector<16x1xf32>
      %46 = vector.extract_strided_slice %27 {offsets = [0, 2], sizes = [16, 1], strides = [1, 1]} : vector<16x4xf32> to vector<16x1xf32>
      %47 = vector.extract_strided_slice %27 {offsets = [0, 3], sizes = [16, 1], strides = [1, 1]} : vector<16x4xf32> to vector<16x1xf32>
      %cst_25 = arith.constant 7.812500e-03 : f32
      %48 = vector.broadcast %cst_25 : f32 to vector<16x1xf32>
      %49 = arith.mulf %44, %48 : vector<16x1xf32>
      %cst_26 = arith.constant 7.812500e-03 : f32
      %50 = vector.broadcast %cst_26 : f32 to vector<16x1xf32>
      %51 = arith.mulf %45, %50 : vector<16x1xf32>
      %52 = arith.mulf %49, %49 : vector<16x1xf32>
      %53 = arith.subf %51, %52 : vector<16x1xf32>
      %cst_27 = arith.constant 9.99999974E-6 : f32
      %54 = vector.broadcast %cst_27 : f32 to vector<16x1xf32>
      %55 = arith.addf %53, %54 : vector<16x1xf32>
      %56 = math.rsqrt %55 : vector<16x1xf32>
      %57 = arith.mulf %46, %56 : vector<16x1xf32>
      %58 = arith.mulf %49, %57 : vector<16x1xf32>
      %59 = arith.subf %47, %58 : vector<16x1xf32>
      %60 = tpu.concatenate %41, %43, %57, %59 in 1 : vector<16x1xf32>, vector<16x1xf32>, vector<16x1xf32>, vector<16x1xf32> -> vector<16x4xf32>
      %c0_28 = arith.constant 0 : index
      %c0_29 = arith.constant 0 : index
      %61 = vector.load %arg5[%c0_28, %c0_29] : memref<16x4xf32, #tpu.memory_space<vmem>>, vector<16x4xf32>
      tpu.vector_store %arg5[%c0_28, %c0_29], %60 {strides = array<i32>} : memref<16x4xf32, #tpu.memory_space<vmem>>, vector<16x4xf32>,
    } else {
    }
    return
  }
  func.func @transform_0(%arg0: i32, %arg1: i32) -> (i32, i32, i32) {
    %c0_i32 = arith.constant 0 : i32
    %c0_i32_0 = arith.constant 0 : i32
    return %arg1, %arg0, %c0_i32 : i32, i32, i32
  }
  func.func @transform_1(%arg0: i32, %arg1: i32) -> (i32, i32, i32) {
    %c0_i32 = arith.constant 0 : i32
    %c0_i32_0 = arith.constant 0 : i32
    return %arg1, %arg0, %c0_i32 : i32, i32, i32
  }
  func.func @transform_2(%arg0: i32, %arg1: i32) -> (i32, i32) {
    %c0_i32 = arith.constant 0 : i32
    %c0_i32_0 = arith.constant 0 : i32
    return %arg0, %c0_i32 : i32, i32
  }
  func.func @transform_3(%arg0: i32, %arg1: i32) -> (i32, i32) {
    %c0_i32 = arith.constant 0 : i32
    %c0_i32_0 = arith.constant 0 : i32
    return %arg0, %c0_i32 : i32, i32
  }
}

</mosaic_0001>

<bundles_post_ra>
// kernel: custom-call.1
= control target key start
LH: loop header
LB: loop body
LE: loop exit
PB: predicated region body
PF: predicated region fallthrough
CT: control target
= control target key end

     0   :  { %s425_s0 = inlined_call_operand.vmem [shape: c64[8,32,16], index: 0, kind: input, shape index: {}]   ;;  %s426_s1 = inlined_call_operand.vmem [shape: f32[8,32,16], index: 1, kind: output, shape index: {}]  }
   0x1   :  { %v160_v0 = vld [vmem:[%s425_s0 + $0x100] sm:$0xff]  ;;  %v161_v1 = vld [vmem:[%s425_s0 + $0x108] sm:$0xff]  ;;  %v163_v2 = vld [vmem:[%s425_s0 + $0x110] sm:$0xff] }
   0x2   :  { %4 = vst [vmem:[%s426_s1] sm:$0xff] %v160_v0  ;;  %162 = vst [vmem:[%s426_s1 + $0x8] sm:$0xff] %v161_v1  ;;  %v165_v3 = vld [vmem:[%s425_s0 + $0x118] sm:$0xff]  ;;  %v167_v4 = vld [vmem:[%s425_s0 + $0x120] sm:$0xff] }
   0x3   :  { %164 = vst [vmem:[%s426_s1 + $0x10] sm:$0xff] %v163_v2  ;;  %v169_v5 = vld [vmem:[%s425_s0 + $0x128] sm:$0xff]  ;;  %166 = vst [vmem:[%s426_s1 + $0x18] sm:$0xff] %v165_v3  ;;  %v171_v6 = vld [vmem:[%s425_s0 + $0x130] sm:$0xff] }
   0x4   :  { %168 = vst [vmem:[%s426_s1 + $0x20] sm:$0xff] %v167_v4  ;;  %170 = vst [vmem:[%s426_s1 + $0x28] sm:$0xff] %v169_v5  ;;  %v173_v7 = vld [vmem:[%s425_s0 + $0x138] sm:$0xff]  ;;  %v175_v8 = vld [vmem:[%s425_s0 + $0x140] sm:$0xff] }
   0x5   :  { %172 = vst [vmem:[%s426_s1 + $0x30] sm:$0xff] %v171_v6  ;;  %174 = vst [vmem:[%s426_s1 + $0x38] sm:$0xff] %v173_v7  ;;  %v177_v9 = vld [vmem:[%s425_s0 + $0x148] sm:$0xff]  ;;  %v179_v10 = vld [vmem:[%s425_s0 + $0x150] sm:$0xff] }
   0x6   :  { %176 = vst [vmem:[%s426_s1 + $0x40] sm:$0xff] %v175_v8  ;;  %v181_v11 = vld [vmem:[%s425_s0 + $0x158] sm:$0xff]  ;;  %178 = vst [vmem:[%s426_s1 + $0x48] sm:$0xff] %v177_v9  ;;  %v183_v12 = vld [vmem:[%s425_s0 + $0x160] sm:$0xff] }
   0x7   :  { %180 = vst [vmem:[%s426_s1 + $0x50] sm:$0xff] %v179_v10  ;;  %182 = vst [vmem:[%s426_s1 + $0x58] sm:$0xff] %v181_v11  ;;  %v185_v13 = vld [vmem:[%s425_s0 + $0x168] sm:$0xff]  ;;  %v187_v14 = vld [vmem:[%s425_s0 + $0x170] sm:$0xff] }
   0x8   :  { %184 = vst [vmem:[%s426_s1 + $0x60] sm:$0xff] %v183_v12  ;;  %186 = vst [vmem:[%s426_s1 + $0x68] sm:$0xff] %v185_v13  ;;  %v189_v15 = vld [vmem:[%s425_s0 + $0x178] sm:$0xff]  ;;  %v191_v16 = vld [vmem:[%s425_s0 + $0x180] sm:$0xff] }
   0x9   :  { %188 = vst [vmem:[%s426_s1 + $0x70] sm:$0xff] %v187_v14  ;;  %v193_v17 = vld [vmem:[%s425_s0 + $0x188] sm:$0xff]  ;;  %190 = vst [vmem:[%s426_s1 + $0x78] sm:$0xff] %v189_v15  ;;  %v195_v18 = vld [vmem:[%s425_s0 + $0x190] sm:$0xff] }
   0xa   :  { %192 = vst [vmem:[%s426_s1 + $0x80] sm:$0xff] %v191_v16  ;;  %194 = vst [vmem:[%s426_s1 + $0x88] sm:$0xff] %v193_v17  ;;  %v197_v19 = vld [vmem:[%s425_s0 + $0x198] sm:$0xff]  ;;  %v199_v20 = vld [vmem:[%s425_s0 + $0x1a0] sm:$0xff] }
   0xb   :  { %196 = vst [vmem:[%s426_s1 + $0x90] sm:$0xff] %v195_v18  ;;  %198 = vst [vmem:[%s426_s1 + $0x98] sm:$0xff] %v197_v19  ;;  %v201_v21 = vld [vmem:[%s425_s0 + $0x1a8] sm:$0xff]  ;;  %v203_v22 = vld [vmem:[%s425_s0 + $0x1b0] sm:$0xff] }
   0xc   :  { %200 = vst [vmem:[%s426_s1 + $0xa0] sm:$0xff] %v199_v20  ;;  %v205_v23 = vld [vmem:[%s425_s0 + $0x1b8] sm:$0xff]  ;;  %202 = vst [vmem:[%s426_s1 + $0xa8] sm:$0xff] %v201_v21  ;;  %v207_v24 = vld [vmem:[%s425_s0 + $0x1c0] sm:$0xff] }
   0xd   :  { %204 = vst [vmem:[%s426_s1 + $0xb0] sm:$0xff] %v203_v22  ;;  %206 = vst [vmem:[%s426_s1 + $0xb8] sm:$0xff] %v205_v23  ;;  %v209_v25 = vld [vmem:[%s425_s0 + $0x1c8] sm:$0xff]  ;;  %v211_v26 = vld [vmem:[%s425_s0 + $0x1d0] sm:$0xff] }
   0xe   :  { %208 = vst [vmem:[%s426_s1 + $0xc0] sm:$0xff] %v207_v24  ;;  %210 = vst [vmem:[%s426_s1 + $0xc8] sm:$0xff] %v209_v25  ;;  %v213_v27 = vld [vmem:[%s425_s0 + $0x1d8] sm:$0xff]  ;;  %v215_v28 = vld [vmem:[%s425_s0 + $0x1e0] sm:$0xff] }
   0xf   :  { %212 = vst [vmem:[%s426_s1 + $0xd0] sm:$0xff] %v211_v26  ;;  %v217_v29 = vld [vmem:[%s425_s0 + $0x1e8] sm:$0xff]  ;;  %214 = vst [vmem:[%s426_s1 + $0xd8] sm:$0xff] %v213_v27  ;;  %v219_v30 = vld [vmem:[%s425_s0 + $0x1f0] sm:$0xff] }
  0x10   :  { %216 = vst [vmem:[%s426_s1 + $0xe0] sm:$0xff] %v215_v28  ;;  %218 = vst [vmem:[%s426_s1 + $0xe8] sm:$0xff] %v217_v29  ;;  %v221_v31 = vld [vmem:[%s425_s0 + $0x1f8] sm:$0xff] }
  0x11   :  { %220 = vst [vmem:[%s426_s1 + $0xf0] sm:$0xff] %v219_v30  ;;  %222 = vst [vmem:[%s426_s1 + $0xf8] sm:$0xff] %v221_v31 }

// kernel: custom-call
= control target key start
LH: loop header
LB: loop body
LE: loop exit
PB: predicated region body
PF: predicated region fallthrough
CT: control target
= control target key end

     0   :  { %s392_s0 = inlined_call_operand.vmem [shape: c64[8,32,16], index: 0, kind: input, shape index: {}]   ;;  %s393_s1 = inlined_call_operand.vmem [shape: f32[8,32,16], index: 1, kind: output, shape index: {}]  }
   0x1   :  { %v2_v0 = vld [vmem:[%s392_s0] sm:$0xff]  ;;  %v128_v1 = vld [vmem:[%s392_s0 + $0x8] sm:$0xff]  ;;  %v130_v2 = vld [vmem:[%s392_s0 + $0x10] sm:$0xff] }
   0x2   :  { %3 = vst [vmem:[%s393_s1] sm:$0xff] %v2_v0  ;;  %129 = vst [vmem:[%s393_s1 + $0x8] sm:$0xff] %v128_v1  ;;  %v132_v3 = vld [vmem:[%s392_s0 + $0x18] sm:$0xff]  ;;  %v134_v4 = vld [vmem:[%s392_s0 + $0x20] sm:$0xff] }
   0x3   :  { %131 = vst [vmem:[%s393_s1 + $0x10] sm:$0xff] %v130_v2  ;;  %v136_v5 = vld [vmem:[%s392_s0 + $0x28] sm:$0xff]  ;;  %133 = vst [vmem:[%s393_s1 + $0x18] sm:$0xff] %v132_v3  ;;  %v138_v6 = vld [vmem:[%s392_s0 + $0x30] sm:$0xff] }
   0x4   :  { %135 = vst [vmem:[%s393_s1 + $0x20] sm:$0xff] %v134_v4  ;;  %137 = vst [vmem:[%s393_s1 + $0x28] sm:$0xff] %v136_v5  ;;  %v140_v7 = vld [vmem:[%s392_s0 + $0x38] sm:$0xff]  ;;  %v142_v8 = vld [vmem:[%s392_s0 + $0x40] sm:$0xff] }
   0x5   :  { %139 = vst [vmem:[%s393_s1 + $0x30] sm:$0xff] %v138_v6  ;;  %141 = vst [vmem:[%s393_s1 + $0x38] sm:$0xff] %v140_v7  ;;  %v144_v9 = vld [vmem:[%s392_s0 + $0x48] sm:$0xff]  ;;  %v146_v10 = vld [vmem:[%s392_s0 + $0x50] sm:$0xff] }
   0x6   :  { %143 = vst [vmem:[%s393_s1 + $0x40] sm:$0xff] %v142_v8  ;;  %v148_v11 = vld [vmem:[%s392_s0 + $0x58] sm:$0xff]  ;;  %145 = vst [vmem:[%s393_s1 + $0x48] sm:$0xff] %v144_v9  ;;  %v150_v12 = vld [vmem:[%s392_s0 + $0x60] sm:$0xff] }
   0x7   :  { %147 = vst [vmem:[%s393_s1 + $0x50] sm:$0xff] %v146_v10  ;;  %149 = vst [vmem:[%s393_s1 + $0x58] sm:$0xff] %v148_v11  ;;  %v152_v13 = vld [vmem:[%s392_s0 + $0x68] sm:$0xff]  ;;  %v154_v14 = vld [vmem:[%s392_s0 + $0x70] sm:$0xff] }
   0x8   :  { %151 = vst [vmem:[%s393_s1 + $0x60] sm:$0xff] %v150_v12  ;;  %153 = vst [vmem:[%s393_s1 + $0x68] sm:$0xff] %v152_v13  ;;  %v156_v15 = vld [vmem:[%s392_s0 + $0x78] sm:$0xff]  ;;  %v158_v16 = vld [vmem:[%s392_s0 + $0x80] sm:$0xff] }
   0x9   :  { %155 = vst [vmem:[%s393_s1 + $0x70] sm:$0xff] %v154_v14  ;;  %v160_v17 = vld [vmem:[%s392_s0 + $0x88] sm:$0xff]  ;;  %157 = vst [vmem:[%s393_s1 + $0x78] sm:$0xff] %v156_v15  ;;  %v162_v18 = vld [vmem:[%s392_s0 + $0x90] sm:$0xff] }
   0xa   :  { %159 = vst [vmem:[%s393_s1 + $0x80] sm:$0xff] %v158_v16  ;;  %161 = vst [vmem:[%s393_s1 + $0x88] sm:$0xff] %v160_v17  ;;  %v164_v19 = vld [vmem:[%s392_s0 + $0x98] sm:$0xff]  ;;  %v166_v20 = vld [vmem:[%s392_s0 + $0xa0] sm:$0xff] }
   0xb   :  { %163 = vst [vmem:[%s393_s1 + $0x90] sm:$0xff] %v162_v18  ;;  %165 = vst [vmem:[%s393_s1 + $0x98] sm:$0xff] %v164_v19  ;;  %v168_v21 = vld [vmem:[%s392_s0 + $0xa8] sm:$0xff]  ;;  %v170_v22 = vld [vmem:[%s392_s0 + $0xb0] sm:$0xff] }
   0xc   :  { %167 = vst [vmem:[%s393_s1 + $0xa0] sm:$0xff] %v166_v20  ;;  %v172_v23 = vld [vmem:[%s392_s0 + $0xb8] sm:$0xff]  ;;  %169 = vst [vmem:[%s393_s1 + $0xa8] sm:$0xff] %v168_v21  ;;  %v174_v24 = vld [vmem:[%s392_s0 + $0xc0] sm:$0xff] }
   0xd   :  { %171 = vst [vmem:[%s393_s1 + $0xb0] sm:$0xff] %v170_v22  ;;  %173 = vst [vmem:[%s393_s1 + $0xb8] sm:$0xff] %v172_v23  ;;  %v176_v25 = vld [vmem:[%s392_s0 + $0xc8] sm:$0xff]  ;;  %v178_v26 = vld [vmem:[%s392_s0 + $0xd0] sm:$0xff] }
   0xe   :  { %175 = vst [vmem:[%s393_s1 + $0xc0] sm:$0xff] %v174_v24  ;;  %177 = vst [vmem:[%s393_s1 + $0xc8] sm:$0xff] %v176_v25  ;;  %v180_v27 = vld [vmem:[%s392_s0 + $0xd8] sm:$0xff]  ;;  %v182_v28 = vld [vmem:[%s392_s0 + $0xe0] sm:$0xff] }
   0xf   :  { %179 = vst [vmem:[%s393_s1 + $0xd0] sm:$0xff] %v178_v26  ;;  %v184_v29 = vld [vmem:[%s392_s0 + $0xe8] sm:$0xff]  ;;  %181 = vst [vmem:[%s393_s1 + $0xd8] sm:$0xff] %v180_v27  ;;  %v186_v30 = vld [vmem:[%s392_s0 + $0xf0] sm:$0xff] }
  0x10   :  { %183 = vst [vmem:[%s393_s1 + $0xe0] sm:$0xff] %v182_v28  ;;  %185 = vst [vmem:[%s393_s1 + $0xe8] sm:$0xff] %v184_v29  ;;  %v188_v31 = vld [vmem:[%s392_s0 + $0xf8] sm:$0xff] }
  0x11   :  { %187 = vst [vmem:[%s393_s1 + $0xf0] sm:$0xff] %v186_v30  ;;  %189 = vst [vmem:[%s393_s1 + $0xf8] sm:$0xff] %v188_v31 }

// kernel: custom-call.2
= control target key start
LH: loop header
LB: loop body
LE: loop exit
PB: predicated region body
PF: predicated region fallthrough
CT: control target
= control target key end

     0   :  { %s812_s0 = inlined_call_operand.vmem [shape: f32[8,32,16], index: 0, kind: input, shape index: {}]   ;;  %s813_s2 = inlined_call_operand.vmem [shape: c64[8,32,16], index: 2, kind: output, shape index: {}]   ;;  %s814_s1 = inlined_call_operand.vmem [shape: f32[8,32,16], index: 1, kind: input, shape index: {}]  }
   0x1   :  { %v5_v0 = vld [vmem:[%s812_s0] sm:$0xff]  ;;  %v288_v1 = vld [vmem:[%s812_s0 + $0x8] sm:$0xff]  ;;  %v290_v2 = vld [vmem:[%s812_s0 + $0x10] sm:$0xff] }
   0x2   :  { %6 = vst [vmem:[%s813_s2] sm:$0xff] %v5_v0  ;;  %289 = vst [vmem:[%s813_s2 + $0x8] sm:$0xff] %v288_v1  ;;  %v292_v3 = vld [vmem:[%s812_s0 + $0x18] sm:$0xff]  ;;  %v294_v4 = vld [vmem:[%s812_s0 + $0x20] sm:$0xff] }
   0x3   :  { %291 = vst [vmem:[%s813_s2 + $0x10] sm:$0xff] %v290_v2  ;;  %v296_v5 = vld [vmem:[%s812_s0 + $0x28] sm:$0xff]  ;;  %293 = vst [vmem:[%s813_s2 + $0x18] sm:$0xff] %v292_v3  ;;  %v298_v6 = vld [vmem:[%s812_s0 + $0x30] sm:$0xff] }
   0x4   :  { %295 = vst [vmem:[%s813_s2 + $0x20] sm:$0xff] %v294_v4  ;;  %297 = vst [vmem:[%s813_s2 + $0x28] sm:$0xff] %v296_v5  ;;  %v300_v7 = vld [vmem:[%s812_s0 + $0x38] sm:$0xff]  ;;  %v302_v8 = vld [vmem:[%s812_s0 + $0x40] sm:$0xff] }
   0x5   :  { %299 = vst [vmem:[%s813_s2 + $0x30] sm:$0xff] %v298_v6  ;;  %301 = vst [vmem:[%s813_s2 + $0x38] sm:$0xff] %v300_v7  ;;  %v304_v9 = vld [vmem:[%s812_s0 + $0x48] sm:$0xff]  ;;  %v306_v10 = vld [vmem:[%s812_s0 + $0x50] sm:$0xff] }
   0x6   :  { %303 = vst [vmem:[%s813_s2 + $0x40] sm:$0xff] %v302_v8  ;;  %v308_v11 = vld [vmem:[%s812_s0 + $0x58] sm:$0xff]  ;;  %305 = vst [vmem:[%s813_s2 + $0x48] sm:$0xff] %v304_v9  ;;  %v310_v12 = vld [vmem:[%s812_s0 + $0x60] sm:$0xff] }
   0x7   :  { %307 = vst [vmem:[%s813_s2 + $0x50] sm:$0xff] %v306_v10  ;;  %309 = vst [vmem:[%s813_s2 + $0x58] sm:$0xff] %v308_v11  ;;  %v312_v13 = vld [vmem:[%s812_s0 + $0x68] sm:$0xff]  ;;  %v314_v14 = vld [vmem:[%s812_s0 + $0x70] sm:$0xff] }
   0x8   :  { %311 = vst [vmem:[%s813_s2 + $0x60] sm:$0xff] %v310_v12  ;;  %313 = vst [vmem:[%s813_s2 + $0x68] sm:$0xff] %v312_v13  ;;  %v316_v15 = vld [vmem:[%s812_s0 + $0x78] sm:$0xff]  ;;  %v318_v16 = vld [vmem:[%s812_s0 + $0x80] sm:$0xff] }
   0x9   :  { %315 = vst [vmem:[%s813_s2 + $0x70] sm:$0xff] %v314_v14  ;;  %v320_v17 = vld [vmem:[%s812_s0 + $0x88] sm:$0xff]  ;;  %317 = vst [vmem:[%s813_s2 + $0x78] sm:$0xff] %v316_v15  ;;  %v322_v18 = vld [vmem:[%s812_s0 + $0x90] sm:$0xff] }
   0xa   :  { %319 = vst [vmem:[%s813_s2 + $0x80] sm:$0xff] %v318_v16  ;;  %321 = vst [vmem:[%s813_s2 + $0x88] sm:$0xff] %v320_v17  ;;  %v324_v19 = vld [vmem:[%s812_s0 + $0x98] sm:$0xff]  ;;  %v326_v20 = vld [vmem:[%s812_s0 + $0xa0] sm:$0xff] }
   0xb   :  { %323 = vst [vmem:[%s813_s2 + $0x90] sm:$0xff] %v322_v18  ;;  %325 = vst [vmem:[%s813_s2 + $0x98] sm:$0xff] %v324_v19  ;;  %v328_v21 = vld [vmem:[%s812_s0 + $0xa8] sm:$0xff]  ;;  %v330_v22 = vld [vmem:[%s812_s0 + $0xb0] sm:$0xff] }
   0xc   :  { %327 = vst [vmem:[%s813_s2 + $0xa0] sm:$0xff] %v326_v20  ;;  %v332_v23 = vld [vmem:[%s812_s0 + $0xb8] sm:$0xff]  ;;  %329 = vst [vmem:[%s813_s2 + $0xa8] sm:$0xff] %v328_v21  ;;  %v334_v24 = vld [vmem:[%s812_s0 + $0xc0] sm:$0xff] }
   0xd   :  { %331 = vst [vmem:[%s813_s2 + $0xb0] sm:$0xff] %v330_v22  ;;  %333 = vst [vmem:[%s813_s2 + $0xb8] sm:$0xff] %v332_v23  ;;  %v336_v25 = vld [vmem:[%s812_s0 + $0xc8] sm:$0xff]  ;;  %v338_v26 = vld [vmem:[%s812_s0 + $0xd0] sm:$0xff] }
   0xe   :  { %335 = vst [vmem:[%s813_s2 + $0xc0] sm:$0xff] %v334_v24  ;;  %337 = vst [vmem:[%s813_s2 + $0xc8] sm:$0xff] %v336_v25  ;;  %v340_v27 = vld [vmem:[%s812_s0 + $0xd8] sm:$0xff]  ;;  %v342_v28 = vld [vmem:[%s812_s0 + $0xe0] sm:$0xff] }
   0xf   :  { %339 = vst [vmem:[%s813_s2 + $0xd0] sm:$0xff] %v338_v26  ;;  %v344_v29 = vld [vmem:[%s812_s0 + $0xe8] sm:$0xff]  ;;  %341 = vst [vmem:[%s813_s2 + $0xd8] sm:$0xff] %v340_v27  ;;  %v346_v30 = vld [vmem:[%s812_s0 + $0xf0] sm:$0xff] }
  0x10   :  { %343 = vst [vmem:[%s813_s2 + $0xe0] sm:$0xff] %v342_v28  ;;  %345 = vst [vmem:[%s813_s2 + $0xe8] sm:$0xff] %v344_v29  ;;  %v348_v31 = vld [vmem:[%s812_s0 + $0xf8] sm:$0xff]  ;;  %v131_v32 = vld [vmem:[%s814_s1] sm:$0xff] }
  0x11   :  { %347 = vst [vmem:[%s813_s2 + $0xf0] sm:$0xff] %v346_v30  ;;  %349 = vst [vmem:[%s813_s2 + $0xf8] sm:$0xff] %v348_v31  ;;  %v351_v33 = vld [vmem:[%s814_s1 + $0x8] sm:$0xff]  ;;  %v353_v34 = vld [vmem:[%s814_s1 + $0x10] sm:$0xff] }
  0x12   :  { %350 = vst [vmem:[%s813_s2 + $0x100] sm:$0xff] %v131_v32  ;;  %v355_v35 = vld [vmem:[%s814_s1 + $0x18] sm:$0xff]  ;;  %352 = vst [vmem:[%s813_s2 + $0x108] sm:$0xff] %v351_v33  ;;  %v357_v36 = vld [vmem:[%s814_s1 + $0x20] sm:$0xff] }
  0x13   :  { %354 = vst [vmem:[%s813_s2 + $0x110] sm:$0xff] %v353_v34  ;;  %356 = vst [vmem:[%s813_s2 + $0x118] sm:$0xff] %v355_v35  ;;  %v359_v37 = vld [vmem:[%s814_s1 + $0x28] sm:$0xff]  ;;  %v361_v38 = vld [vmem:[%s814_s1 + $0x30] sm:$0xff] }
  0x14   :  { %358 = vst [vmem:[%s813_s2 + $0x120] sm:$0xff] %v357_v36  ;;  %360 = vst [vmem:[%s813_s2 + $0x128] sm:$0xff] %v359_v37  ;;  %v363_v39 = vld [vmem:[%s814_s1 + $0x38] sm:$0xff]  ;;  %v365_v40 = vld [vmem:[%s814_s1 + $0x40] sm:$0xff] }
  0x15   :  { %362 = vst [vmem:[%s813_s2 + $0x130] sm:$0xff] %v361_v38  ;;  %v367_v41 = vld [vmem:[%s814_s1 + $0x48] sm:$0xff]  ;;  %364 = vst [vmem:[%s813_s2 + $0x138] sm:$0xff] %v363_v39  ;;  %v369_v42 = vld [vmem:[%s814_s1 + $0x50] sm:$0xff] }
  0x16   :  { %366 = vst [vmem:[%s813_s2 + $0x140] sm:$0xff] %v365_v40  ;;  %368 = vst [vmem:[%s813_s2 + $0x148] sm:$0xff] %v367_v41  ;;  %v371_v43 = vld [vmem:[%s814_s1 + $0x58] sm:$0xff]  ;;  %v373_v44 = vld [vmem:[%s814_s1 + $0x60] sm:$0xff] }
  0x17   :  { %370 = vst [vmem:[%s813_s2 + $0x150] sm:$0xff] %v369_v42  ;;  %372 = vst [vmem:[%s813_s2 + $0x158] sm:$0xff] %v371_v43  ;;  %v375_v45 = vld [vmem:[%s814_s1 + $0x68] sm:$0xff]  ;;  %v377_v46 = vld [vmem:[%s814_s1 + $0x70] sm:$0xff] }
  0x18   :  { %374 = vst [vmem:[%s813_s2 + $0x160] sm:$0xff] %v373_v44  ;;  %v379_v47 = vld [vmem:[%s814_s1 + $0x78] sm:$0xff]  ;;  %376 = vst [vmem:[%s813_s2 + $0x168] sm:$0xff] %v375_v45  ;;  %v381_v48 = vld [vmem:[%s814_s1 + $0x80] sm:$0xff] }
  0x19   :  { %378 = vst [vmem:[%s813_s2 + $0x170] sm:$0xff] %v377_v46  ;;  %380 = vst [vmem:[%s813_s2 + $0x178] sm:$0xff] %v379_v47  ;;  %v383_v49 = vld [vmem:[%s814_s1 + $0x88] sm:$0xff]  ;;  %v385_v50 = vld [vmem:[%s814_s1 + $0x90] sm:$0xff] }
  0x1a   :  { %382 = vst [vmem:[%s813_s2 + $0x180] sm:$0xff] %v381_v48  ;;  %384 = vst [vmem:[%s813_s2 + $0x188] sm:$0xff] %v383_v49  ;;  %v387_v51 = vld [vmem:[%s814_s1 + $0x98] sm:$0xff]  ;;  %v389_v52 = vld [vmem:[%s814_s1 + $0xa0] sm:$0xff] }
  0x1b   :  { %386 = vst [vmem:[%s813_s2 + $0x190] sm:$0xff] %v385_v50  ;;  %v391_v53 = vld [vmem:[%s814_s1 + $0xa8] sm:$0xff]  ;;  %388 = vst [vmem:[%s813_s2 + $0x198] sm:$0xff] %v387_v51  ;;  %v393_v54 = vld [vmem:[%s814_s1 + $0xb0] sm:$0xff] }
  0x1c   :  { %390 = vst [vmem:[%s813_s2 + $0x1a0] sm:$0xff] %v389_v52  ;;  %392 = vst [vmem:[%s813_s2 + $0x1a8] sm:$0xff] %v391_v53  ;;  %v395_v55 = vld [vmem:[%s814_s1 + $0xb8] sm:$0xff]  ;;  %v397_v56 = vld [vmem:[%s814_s1 + $0xc0] sm:$0xff] }
  0x1d   :  { %394 = vst [vmem:[%s813_s2 + $0x1b0] sm:$0xff] %v393_v54  ;;  %396 = vst [vmem:[%s813_s2 + $0x1b8] sm:$0xff] %v395_v55  ;;  %v399_v57 = vld [vmem:[%s814_s1 + $0xc8] sm:$0xff]  ;;  %v401_v58 = vld [vmem:[%s814_s1 + $0xd0] sm:$0xff] }
  0x1e   :  { %398 = vst [vmem:[%s813_s2 + $0x1c0] sm:$0xff] %v397_v56  ;;  %v403_v59 = vld [vmem:[%s814_s1 + $0xd8] sm:$0xff]  ;;  %400 = vst [vmem:[%s813_s2 + $0x1c8] sm:$0xff] %v399_v57  ;;  %v405_v60 = vld [vmem:[%s814_s1 + $0xe0] sm:$0xff] }
  0x1f   :  { %402 = vst [vmem:[%s813_s2 + $0x1d0] sm:$0xff] %v401_v58  ;;  %404 = vst [vmem:[%s813_s2 + $0x1d8] sm:$0xff] %v403_v59  ;;  %v407_v61 = vld [vmem:[%s814_s1 + $0xe8] sm:$0xff]  ;;  %v409_v62 = vld [vmem:[%s814_s1 + $0xf0] sm:$0xff] }
  0x20   :  { %406 = vst [vmem:[%s813_s2 + $0x1e0] sm:$0xff] %v405_v60  ;;  %408 = vst [vmem:[%s813_s2 + $0x1e8] sm:$0xff] %v407_v61  ;;  %v411_v63 = vld [vmem:[%s814_s1 + $0xf8] sm:$0xff] }
  0x21   :  { %410 = vst [vmem:[%s813_s2 + $0x1f0] sm:$0xff] %v409_v62  ;;  %412 = vst [vmem:[%s813_s2 + $0x1f8] sm:$0xff] %v411_v63 }

// kernel: naive_complex_batchnorm1d.3
= control target key start
LH: loop header
LB: loop body
LE: loop exit
PB: predicated region body
PF: predicated region fallthrough
CT: control target
= control target key end

     0   :  { %s878_s15 = smov 0   ;;  %s880_s16 = smov 0   ;;  %s1017_s0 = inlined_call_operand.vmem [shape: f32[32,4], index: 0, kind: input, shape index: {}]   ;;  %s1018_s1 = inlined_call_operand.vmem [shape: f32[8,32,16], index: 1, kind: input, shape index: {}]   ;;  %s1019_s2 = inlined_call_operand.vmem [shape: f32[8,32,16], index: 2, kind: input, shape index: {}]   ;;  %s1020_s3 = inlined_call_operand.vmem [shape: f32[8,32,16], index: 3, kind: output, shape index: {0}]   ;;  %s1021_s4 = inlined_call_operand.vmem [shape: f32[8,32,16], index: 4, kind: output, shape index: {1}]  }
   0x1   :  { %s882_s17 = smov 0   ;;  %s884_s18 = smov 0  }
   0x2   :  { %s886_s19 = smov 0   ;;  %s888_s20 = smov 0  }
   0x3   :  { %s890_s21 = smov 0  }
   0x4 LB: > { %s24_s22 = sadd.s32 1, %s839_s19  ;;  %s27_s23 = sadd.s32 1, %s843_s20  ;;  %s847_s21 = sphi %s890_s21, %s15_s21   ;;  %s843_s20 = sphi %s888_s20, %s1029_s20   ;;  %s839_s19 = sphi %s886_s19, %s1028_s19   ;;  %s835_s18 = sphi %s884_s18, %s1027_s18   ;;  %s831_s17 = sphi %s882_s17, %s1026_s17   ;;  %s827_s16 = sphi %s880_s16, %s1025_s16   ;;  %s823_s15 = sphi %s878_s15, %s1024_s15  }
   0x5   : > { %p25_p0 = scmp.ge.s32.totalorder %s24_s22, 4  ;;  %s690_s24 = sadd.s32 4294967295, %s847_s21  }
   0x6   : > { %p69_p1 = scmp.ne.s32.totalorder %s827_s16, %s823_s15  ;;  %p70_p2 = scmp.eq.s32.totalorder %s847_s21, 0 }
   0x7   : > { %s1031_s22 = smov (%p25_p0, %s24_s22), 0  ;;  %s1033_s23 = smov (!%p25_p0, %s27_s23), %s843_s20 }
   0x8   : > { %p29_p3 = scmp.ge.s32.totalorder %s1033_s23, 2  ;;  %p129_p4 = scmp.eq.s32.totalorder %s690_s24, 7 }
   0x9   : > { %s57_s25 = ssub.s32 %s839_s19, %s1031_s22  ;;  %p924_p5 = por %p70_p2, %p69_p1 }
   0xa   : > { %s1035_s23 = smov (%p29_p3, %s1033_s23), 0  ;;  %p930_p6 = por %p129_p4, %p69_p1 }
   0xb   : > { %s58_s28 = ssub.s32 %s843_s20, %s1035_s23  ;;  %s62_s30 = sadd.s32 1, %s827_s16 }
   0xc   : > { %s59_s29 = sor.u32 %s58_s28, %s57_s25  ;;  %p693_p8 = scmp.ge.s32.totalorder %s847_s21, 8 }
   0xd   : > { %p60_p7 = scmp.eq.s32.totalorder %s59_s29, 0 }
   0xe   : > { %179 = sbr.rel (%p693_p8) target bundleno = 39 (0x27), region = 16 }
   0xf   : > { %s938_s5 = scalar_select %p60_p7, %s827_s16, %s62_s30  }
  0x15   : > { %191 = sbr.rel (!%p924_p5) target bundleno = 30 (0x1e), region = 24  ;;  %s193_s6 = sand.u32 (%p924_p5), 1, %s827_s16  }
  0x16   : > { %s696_s7 = sshll.u32 (%p924_p5), %s843_s20, 1  ;;  %s694_s8 = sshll.u32 (%p924_p5), %s193_s6, 5 }
  0x17   : > { %s723_s9 = sshll.u32 (%p924_p5), %s839_s19, 3  ;;  %s195_s24 = scalar_lea.vmem (%p924_p5), [#allocation2], %s694_s8 }
  0x18   : > { %s199_s10 = sadd.s32 (%p924_p5), %s723_s9, %s696_s7 }
  0x19   : > { %s698_s11 = sshll.u32 (%p924_p5), %s199_s10, 3 }
  0x1a   : > { %s201_s14 = scalar_lea.vmem (%p924_p5), %s1018_s1, %s698_s11 }
  0x1b   : > { %v235_v0 = vld [vmem:[%s201_s14] sm:$0xff] (%p924_p5)  ;;  %v237_v1 = vld [vmem:[%s201_s14 + $0x8] sm:$0xff] (%p924_p5) }
  0x1c   : > { %v239_v2 = vld [vmem:[%s201_s14 + $0x20] sm:$0xff]  ;;  %236 = vst [vmem:[%s195_s24] sm:$0xff] %v235_v0  ;;  %238 = vst [vmem:[%s195_s24 + $0x8] sm:$0xff] %v237_v1  ;;  %v241_v3 = vld [vmem:[%s201_s14 + $0x28] sm:$0xff] }
  0x1d   : > { %240 = vst [vmem:[%s195_s24 + $0x10] sm:$0xff] %v239_v2  ;;  %242 = vst [vmem:[%s195_s24 + $0x18] sm:$0xff] %v241_v3 }
  0x1e PF: > { %248 = sbr.rel (!%p924_p5) target bundleno = 39 (0x27), region = 62  ;;  %s250_s25 = sand.u32 (%p924_p5), 1, %s827_s16  }
  0x1f   : > { %s701_s28 = sshll.u32 (%p924_p5), %s843_s20, 1  ;;  %s699_s29 = sshll.u32 (%p924_p5), %s250_s25, 5 }
  0x20   : > { %s724_s30 = sshll.u32 (%p924_p5), %s839_s19, 3  ;;  %s252_s11 = scalar_lea.vmem (%p924_p5), [#allocation3], %s699_s29 }
  0x21   : > { %s256_s6 = sadd.s32 (%p924_p5), %s724_s30, %s701_s28 }
  0x22   : > { %s703_s7 = sshll.u32 (%p924_p5), %s256_s6, 3 }
  0x23   : > { %s258_s10 = scalar_lea.vmem (%p924_p5), %s1019_s2, %s703_s7 }
  0x24   : > { %v292_v4 = vld [vmem:[%s258_s10] sm:$0xff] (%p924_p5)  ;;  %v294_v5 = vld [vmem:[%s258_s10 + $0x8] sm:$0xff] (%p924_p5) }
  0x25   : > { %v296_v6 = vld [vmem:[%s258_s10 + $0x20] sm:$0xff]  ;;  %293 = vst [vmem:[%s252_s11] sm:$0xff] %v292_v4  ;;  %295 = vst [vmem:[%s252_s11 + $0x8] sm:$0xff] %v294_v5  ;;  %v298_v7 = vld [vmem:[%s258_s10 + $0x28] sm:$0xff] }
  0x26   : > { %297 = vst [vmem:[%s252_s11 + $0x10] sm:$0xff] %v296_v6  ;;  %299 = vst [vmem:[%s252_s11 + $0x18] sm:$0xff] %v298_v7 }
  0x27 PF: > { %p704_p9 = scmp.ge.s32.totalorder %s847_s21, 1  ;;  %p304_p10 = scmp.lt.s32.totalorder %s847_s21, 9 }
  0x29   : > { %p305_p11 = pnand %p704_p9, %p304_p10 }
  0x2a   : > { %s960_s26 = sshll.u32 (!%p305_p11), %s835_s18, 1  ;;  %v849_v8 = vmov (!%p305_p11), 2   ;;  %v850_v9 = vmov (!%p305_p11), 0   ;;  %v851_v12 = vmov (!%p305_p11), 1   ;;  %v852_v13 = vmov (!%p305_p11), 3   ;;  %s311_s18 = sand.u32 (!%p305_p11), 1, %s823_s15  }
  0x2b   : > { %308 = sbr.rel (%p305_p11) target bundleno = 212 (0xd4), region = 100  ;;  %788 = vset.pattern.permute.xlu1 (!%p305_p11), %v849_v8  ;;  %787 = vset.pattern.permute.xlu0 (!%p305_p11), %v850_v9  ;;  %p356_p12 = scmp.lt.s32.totalorder (!%p305_p11), %s960_s26, 3  ;;  %vm401_vm0 = vcmask (!%p305_p11), 130048  }
  0x2c   : > { %s968_s28 = sshll.u32 (!%p305_p11), %s311_s18, 5 }
  0x2d   : > { %s313_s29 = scalar_lea.vmem (!%p305_p11), [#allocation2], %s968_s28  ;;  %s320_s30 = scalar_lea.vmem (!%p305_p11), [#allocation3], %s968_s28 }
  0x2e   : > { %v371_v16 = vld [vmem:[%s313_s29] sm:$0xff] (!%p305_p11)  ;;  %v373_v19 = vld [vmem:[%s313_s29 + $0x10] sm:$0xff] (!%p305_p11)  ;;  %v372_v20 = vld [vmem:[%s313_s29 + $0x8] sm:$0xff] (!%p305_p11)  ;;  %s348_s15 = scalar_lea.vmem (!%p305_p11), [#allocation4], %s968_s28  ;;  %s354_s6 = scalar_lea.vmem (!%p305_p11), [#allocation5], %s968_s28 }
  0x2f   : > { %v374_v21 = vld [vmem:[%s313_s29 + $0x18] sm:$0xff] (!%p305_p11)  ;;  %v406_v26 = vld [vmem:[%s320_s30] sm:$0xff] (!%p305_p11)  ;;  %v408_v29 = vld [vmem:[%s320_s30 + $0x10] sm:$0xff] (!%p305_p11) }
  0x30   : > { %v407_v30 = vld [vmem:[%s320_s30 + $0x8] sm:$0xff] (!%p305_p11)  ;;  %v409_v31 = vld [vmem:[%s320_s30 + $0x18] sm:$0xff] (!%p305_p11) }
  0x32   : > { %s357_s12 = scalar_select %p356_p12, %s960_s26, 3 }
  0x33   : > { %s725_s7 = sshll.u32 (%p930_p6), %s831_s17, 3 }
  0x34   : > { %s710_s13 = sshll.u32 %s357_s12, 3  ;;  %s452_s9 = sadd.s32 (%p930_p6), %s725_s7, %s960_s26 }
  0x35   : > { %s359_s25 = scalar_lea.vmem %s1017_s0, %s710_s13  ;;  %s716_s8 = sshll.u32 (%p930_p6), %s452_s9, 3 }
  0x36   : > { %v369_v10 = vld [vmem:[%s359_s25] sm:$0xff]  ;;  %v370_v11 = vld [vmem:[%s359_s25 + $0x8] sm:$0xff]  ;;  %s454_s12 = scalar_lea.vmem (%p930_p6), %s1020_s3, %s716_s8 }
  0x37   : > { %411 = vperm.xlu1 %788, %v369_v10   ;;  %377 = vperm.xlu0 %787, %v369_v10  }
  0x3b   : > { %415 = vperm.xlu1 %788, %v370_v11   ;;  %382 = vperm.xlu0 %787, %v370_v11  }
  0x3f   : > { %790 = vset.pattern.permute.xlu1 %v851_v12  ;;  %789 = vset.pattern.permute.xlu0 %v851_v12 }
  0x40   : > { %394 = vperm.xlu1 %790, %v370_v11   ;;  %390 = vperm.xlu0 %789, %v369_v10  }
  0x44   : > { %791 = vset.pattern.permute.xlu1 %v852_v13  ;;  %792 = vset.pattern.permute.xlu0 %v852_v13 }
  0x45   : > { %423 = vperm.xlu1 %791, %v369_v10   ;;  %427 = vperm.xlu0 %792, %v370_v11  }
  0xb6   : > { %v412_v14 = vpop.permute.xlu1 %411  ;;  %v378_v15 = vpop.permute.xlu0 %377 }
  0xb7   : > { %v385_v22 = vmul.f32 %v378_v15, %v371_v16  ;;  %v387_v23 = vmul.f32 %v378_v15, %v373_v19  ;;  %v418_v36 = vmul.f32 %v412_v14, %v406_v26  ;;  %v420_v37 = vmul.f32 %v412_v14, %v408_v29 }
  0xba   : > { %v416_v17 = vpop.permute.xlu1 %415  ;;  %v383_v18 = vpop.permute.xlu0 %382 }
  0xbb   : > { %v386_v24 = vmul.f32 %v383_v18, %v372_v20  ;;  %v388_v25 = vmul.f32 %v383_v18, %v374_v21  ;;  %v419_v38 = vmul.f32 %v416_v17, %v407_v30  ;;  %v421_v39 = vmul.f32 %v416_v17, %v409_v31 }
  0xbf   : > { %v395_v27 = vpop.permute.xlu1 %394  ;;  %v391_v28 = vpop.permute.xlu0 %390 }
  0xc0   : > { %v398_v32 = vadd.f32 %v395_v27, %v386_v24  ;;  %v400_v33 = vadd.f32 %v395_v27, %v388_v25  ;;  %v397_v34 = vadd.f32 %v391_v28, %v385_v22  ;;  %v399_v35 = vadd.f32 %v391_v28, %v387_v23 }
  0xc2   : > { %403 = vst.msk [vmem:[%s348_s15 + $0x8] sm:$0xff] %vm401_vm0, %v398_v32  ;;  %405 = vst.msk [vmem:[%s348_s15 + $0x18] sm:$0xff] %vm401_vm0, %v400_v33  ;;  %448 = sbr.rel (!%p930_p6) target bundleno = 204 (0xcc), region = 112 }
  0xc3   : > { %402 = vst.msk [vmem:[%s348_s15] sm:$0xff] %vm401_vm0, %v397_v34  ;;  %404 = vst.msk [vmem:[%s348_s15 + $0x10] sm:$0xff] %vm401_vm0, %v399_v35 }
  0xc4   : > { %v424_v40 = vpop.permute.xlu1 %423  ;;  %v428_v41 = vpop.permute.xlu0 %427 }
  0xc5   : > { %v430_v42 = vadd.f32 %v424_v40, %v418_v36  ;;  %v432_v43 = vadd.f32 %v424_v40, %v420_v37  ;;  %v431_v44 = vadd.f32 %v428_v41, %v419_v38  ;;  %v433_v45 = vadd.f32 %v428_v41, %v421_v39 }
  0xc7   : > { %434 = vst.msk [vmem:[%s354_s6] sm:$0xff] %vm401_vm0, %v430_v42  ;;  %436 = vst.msk [vmem:[%s354_s6 + $0x10] sm:$0xff] %vm401_vm0, %v432_v43 }
  0xc8   : > { %435 = vst.msk [vmem:[%s354_s6 + $0x8] sm:$0xff] %vm401_vm0, %v431_v44  ;;  %437 = vst.msk [vmem:[%s354_s6 + $0x18] sm:$0xff] %vm401_vm0, %v433_v45 }
  0xc9   : > { %v490_v47 = vld [vmem:[%s348_s15 + $0x8] sm:$0xff]  ;;  %v494_v49 = vld [vmem:[%s348_s15 + $0x18] sm:$0xff] }
  0xca   : > { %v488_v46 = vld [vmem:[%s348_s15] sm:$0xff]  ;;  %v492_v48 = vld [vmem:[%s348_s15 + $0x10] sm:$0xff]  ;;  %491 = vst [vmem:[%s454_s12 + $0x8] sm:$0xff] %v490_v47  ;;  %495 = vst [vmem:[%s454_s12 + $0x28] sm:$0xff] %v494_v49 }
  0xcb   : > { %489 = vst [vmem:[%s454_s12] sm:$0xff] %v488_v46  ;;  %493 = vst [vmem:[%s454_s12 + $0x20] sm:$0xff] %v492_v48 }
  0xcc PF: > { %501 = sbr.rel (!%p930_p6) target bundleno = 212 (0xd4), region = 150  ;;  %s726_s13 = sshll.u32 (%p930_p6), %s831_s17, 3 }
  0xcd   : > { %s505_s14 = sadd.s32 (%p930_p6), %s726_s13, %s960_s26 }
  0xce   : > { %s720_s24 = sshll.u32 (%p930_p6), %s505_s14, 3 }
  0xcf   : > { %s507_s28 = scalar_lea.vmem (%p930_p6), %s1021_s4, %s720_s24 }
  0xd1   : > { %v541_v50 = vld [vmem:[%s354_s6] sm:$0xff] (%p930_p6)  ;;  %v545_v52 = vld [vmem:[%s354_s6 + $0x10] sm:$0xff] (%p930_p6) }
  0xd2   : > { %v543_v51 = vld [vmem:[%s354_s6 + $0x8] sm:$0xff] (%p930_p6)  ;;  %v547_v53 = vld [vmem:[%s354_s6 + $0x18] sm:$0xff] (%p930_p6)  ;;  %542 = vst [vmem:[%s507_s28] sm:$0xff] (%p930_p6), %v541_v50  ;;  %546 = vst [vmem:[%s507_s28 + $0x20] sm:$0xff] (%p930_p6), %v545_v52 }
  0xd3   : > { %544 = vst [vmem:[%s507_s28 + $0x8] sm:$0xff] %v543_v51  ;;  %548 = vst [vmem:[%s507_s28 + $0x28] sm:$0xff] %v547_v53 }
  0xd4 PF: > { %s15_s21 = sadd.s32 1, %s847_s21   ;;  %s1024_s15 = smov %s827_s16 }
  0xd5   : > { %p12_p13 = scmp.ge.s32.totalorder %s15_s21, 10   ;;  %s1025_s16 = smov %s938_s5 }
  0xd6   : > { %s1026_s17 = smov %s839_s19  ;;  %s1027_s18 = smov %s843_s20 }
  0xd7   : > { %s1028_s19 = smov %s1031_s22  ;;  %s1029_s20 = smov %s1035_s23 }
  0xd8   :  { %14 = sbr.rel (!%p12_p13) target bundleno = 4 (0x4), region = 242 }

// kernel: naive_complex_batchnorm1d.2
= control target key start
LH: loop header
LB: loop body
LE: loop exit
PB: predicated region body
PF: predicated region fallthrough
CT: control target
= control target key end

     0   :  { %s757_s12 = smov 0   ;;  %s759_s13 = smov 0   ;;  %s912_s0 = inlined_call_operand.vmem [shape: f32[8,32,16], index: 0, kind: input, shape index: {}]   ;;  %s913_s1 = inlined_call_operand.vmem [shape: f32[8,32,16], index: 1, kind: input, shape index: {}]   ;;  %s914_s2 = inlined_call_operand.vmem [shape: f32[32,4], index: 2, kind: input, shape index: {}]   ;;  %s915_s3 = inlined_call_operand.vmem [shape: f32[32,4], index: 3, kind: output, shape index: {}]  }
   0x1   :  { %s761_s14 = smov 0   ;;  %s763_s15 = smov 0  }
   0x2   :  { %s765_s16 = smov 0   ;;  %s767_s17 = smov 0  }
   0x3   :  { %s769_s18 = smov 0  }
   0x4 LB: > { %s22_s19 = sadd.s32 1, %s724_s16  ;;  %s25_s20 = sadd.s32 1, %s728_s17  ;;  %s732_s18 = sphi %s769_s18, %s13_s18   ;;  %s728_s17 = sphi %s767_s17, %s922_s17   ;;  %s724_s16 = sphi %s765_s16, %s921_s16   ;;  %s720_s15 = sphi %s763_s15, %s920_s15   ;;  %s716_s14 = sphi %s761_s14, %s919_s14   ;;  %s712_s13 = sphi %s759_s13, %s918_s13   ;;  %s708_s12 = sphi %s757_s12, %s917_s12  }
   0x5   : > { %p23_p0 = scmp.ge.s32.totalorder %s22_s19, 4  ;;  %p41_p1 = scmp.ne.s32.totalorder %s712_s13, %s708_s12 }
   0x6   : > { %p42_p2 = scmp.eq.s32.totalorder %s732_s18, 0  ;;  %s34_s25 = sadd.s32 1, %s712_s13 }
   0x7   : > { %s924_s19 = smov (%p23_p0, %s22_s19), 0  ;;  %s926_s20 = smov (!%p23_p0, %s25_s20), %s728_s17 }
   0x8   : > { %p800_p3 = por %p42_p2, %p41_p1  ;;  %p27_p4 = scmp.ge.s32.totalorder %s926_s20, 2 }
   0x9   : > { %s29_s22 = ssub.s32 %s724_s16, %s924_s19  ;;  %p591_p6 = scmp.ge.s32.totalorder %s732_s18, 8 }
   0xa   : > { %s928_s20 = smov (%p27_p4, %s926_s20), 0 }
   0xb   : > { %s30_s23 = ssub.s32 %s728_s17, %s928_s20  ;;  %147 = sbr.rel (%p591_p6) target bundleno = 36 (0x24), region = 16 }
   0xc   : > { %s31_s24 = sor.u32 %s30_s23, %s29_s22 }
   0xd   : > { %p32_p5 = scmp.eq.s32.totalorder %s31_s24, 0 }
   0xf   : > { %s812_s26 = scalar_select %p32_p5, %s712_s13, %s34_s25  }
  0x12   : > { %150 = sbr.rel (!%p800_p3) target bundleno = 27 (0x1b), region = 20  ;;  %s152_s27 = sand.u32 (%p800_p3), 1, %s712_s13  }
  0x13   : > { %s594_s28 = sshll.u32 (%p800_p3), %s728_s17, 1  ;;  %s592_s29 = sshll.u32 (%p800_p3), %s152_s27, 5 }
  0x14   : > { %s613_s30 = sshll.u32 (%p800_p3), %s724_s16, 3  ;;  %s154_s9 = scalar_lea.vmem (%p800_p3), [#allocation3], %s592_s29 }
  0x15   : > { %s158_s4 = sadd.s32 (%p800_p3), %s613_s30, %s594_s28 }
  0x16   : > { %s596_s5 = sshll.u32 (%p800_p3), %s158_s4, 3 }
  0x17   : > { %s160_s8 = scalar_lea.vmem (%p800_p3), %s912_s0, %s596_s5 }
  0x18   : > { %v194_v0 = vld [vmem:[%s160_s8] sm:$0xff] (%p800_p3)  ;;  %v196_v1 = vld [vmem:[%s160_s8 + $0x8] sm:$0xff] (%p800_p3) }
  0x19   : > { %v198_v2 = vld [vmem:[%s160_s8 + $0x20] sm:$0xff]  ;;  %195 = vst [vmem:[%s154_s9] sm:$0xff] %v194_v0  ;;  %197 = vst [vmem:[%s154_s9 + $0x8] sm:$0xff] %v196_v1  ;;  %v200_v3 = vld [vmem:[%s160_s8 + $0x28] sm:$0xff] }
  0x1a   : > { %199 = vst [vmem:[%s154_s9 + $0x10] sm:$0xff] %v198_v2  ;;  %201 = vst [vmem:[%s154_s9 + $0x18] sm:$0xff] %v200_v3 }
  0x1b PF: > { %207 = sbr.rel (!%p800_p3) target bundleno = 36 (0x24), region = 58  ;;  %s209_s10 = sand.u32 (%p800_p3), 1, %s712_s13  }
  0x1c   : > { %s599_s11 = sshll.u32 (%p800_p3), %s728_s17, 1  ;;  %s597_s22 = sshll.u32 (%p800_p3), %s209_s10, 5 }
  0x1d   : > { %s614_s23 = sshll.u32 (%p800_p3), %s724_s16, 3  ;;  %s211_s30 = scalar_lea.vmem (%p800_p3), [#allocation4], %s597_s22 }
  0x1e   : > { %s215_s24 = sadd.s32 (%p800_p3), %s614_s23, %s599_s11 }
  0x1f   : > { %s601_s25 = sshll.u32 (%p800_p3), %s215_s24, 3 }
  0x20   : > { %s217_s29 = scalar_lea.vmem (%p800_p3), %s913_s1, %s601_s25 }
  0x21   : > { %v251_v4 = vld [vmem:[%s217_s29] sm:$0xff] (%p800_p3)  ;;  %v253_v5 = vld [vmem:[%s217_s29 + $0x8] sm:$0xff] (%p800_p3) }
  0x22   : > { %v255_v6 = vld [vmem:[%s217_s29 + $0x20] sm:$0xff]  ;;  %252 = vst [vmem:[%s211_s30] sm:$0xff] %v251_v4  ;;  %254 = vst [vmem:[%s211_s30 + $0x8] sm:$0xff] %v253_v5  ;;  %v257_v7 = vld [vmem:[%s217_s29 + $0x28] sm:$0xff] }
  0x23   : > { %256 = vst [vmem:[%s211_s30 + $0x10] sm:$0xff] %v255_v6  ;;  %258 = vst [vmem:[%s211_s30 + $0x18] sm:$0xff] %v257_v7 }
  0x24 PF: > { %p602_p7 = scmp.ge.s32.totalorder %s732_s18, 1  ;;  %p272_p8 = scmp.lt.s32.totalorder %s732_s18, 9 }
  0x26   : > { %p273_p9 = pnand %p602_p7, %p272_p8 }
  0x27   : > { %s279_s21 = sand.u32 (!%p273_p9), 1, %s708_s12   ;;  %s605_s4 = sshll.u32 (!%p273_p9), %s720_s15, 1 }
  0x28   : > { %276 = sbr.rel (%p273_p9) target bundleno = 602 (0x25a), region = 100  ;;  %s603_s5 = sshll.u32 (!%p273_p9), %s279_s21, 5 }
  0x29   : > { %p323_p10 = scmp.lt.s32.totalorder (!%p273_p9), %s605_s4, 3  ;;  %s281_s23 = scalar_lea.vmem (!%p273_p9), [#allocation3], %s603_s5 }
  0x2a   : > { %s288_s24 = scalar_lea.vmem (!%p273_p9), [#allocation4], %s603_s5  ;;  %p609_p11 = scmp.ne.s32.totalorder (!%p273_p9), %s716_s14, 0 }
  0x2f   : > { %s930_s4 = smov (!%p323_p10, %s605_s4), 3  ;;  %337 = sbr.rel (%p609_p11) target bundleno = 54 (0x36), region = 112 }
  0x30   : > { %s606_s6 = sshll.u32 %s930_s4, 3  ;;  %vm338_vm0 = vcmask (!%p609_p11), 31744   ;;  %v734_v8 = vmov (!%p609_p11), 0.0  }
  0x31   : > { %s838_s9 = scalar_lea.vmem %s914_s2, %s606_s6  ;;  %s843_s22 = scalar_lea.vmem %s915_s3, %s606_s6  ;;  %339 = vst.msk [vmem:[#allocation2] sm:$0xff] (!%p609_p11), %vm338_vm0, %v734_v8  ;;  %340 = vst.msk [vmem:[#allocation2 + $0x8] sm:$0xff] (!%p609_p11), %vm338_vm0, %v734_v8 }
  0x36 PF: > { %v341_v9 = vld [vmem:[%s281_s23] sm:$0xff]  ;;  %v343_v10 = vld [vmem:[%s281_s23 + $0x10] sm:$0xff]  ;;  %vm349_vm1 = vcmask 130048   ;;  %v342_v11 = vld [vmem:[%s281_s23 + $0x8] sm:$0xff]  ;;  %vm408_vm2 = vcmask 7168   ;;  %vm411_vm3 = vcmask 15360  }
  0x37   : > { %v350_v12 = vsel %vm349_vm1, %v341_v9, 0.0  ;;  %v351_v13 = vsel %vm349_vm1, %v343_v10, 0.0  ;;  %v356_v14 = vmul.f32 %v341_v9, %v341_v9  ;;  %v358_v15 = vmul.f32 %v343_v10, %v343_v10  ;;  %v344_v16 = vld [vmem:[%s281_s23 + $0x18] sm:$0xff]  ;;  %v345_v17 = vld [vmem:[%s288_s24] sm:$0xff]  ;;  %v347_v22 = vld [vmem:[%s288_s24 + $0x10] sm:$0xff]  ;;  %p610_p12 = scmp.ne.s32.totalorder %s716_s14, 3 }
  0x38   : > { %v352_v18 = vadd.f32 %v351_v13, %v350_v12  ;;  %v353_v19 = vsel %vm349_vm1, %v342_v11, 0.0  ;;  %v354_v20 = vsel %vm349_vm1, %v344_v16, 0.0  ;;  %v357_v21 = vmul.f32 %v342_v11, %v342_v11  ;;  %v346_v23 = vld [vmem:[%s288_s24 + $0x8] sm:$0xff]  ;;  %v348_v28 = vld [vmem:[%s288_s24 + $0x18] sm:$0xff]  ;;  %v406_v0 = vld [vmem:[#allocation2] sm:$0xff]  ;;  %s735_s12 = smov (!%p610_p12), 1  }
  0x39   : > { %v360_v24 = vsel %vm349_vm1, %v356_v14, 0.0  ;;  %v361_v25 = vsel %vm349_vm1, %v358_v15, 0.0  ;;  %v355_v26 = vadd.f32 %v354_v20, %v353_v19  ;;  %v359_v27 = vmul.f32 %v344_v16, %v344_v16  ;;  %v407_v5 = vld [vmem:[#allocation2 + $0x8] sm:$0xff]  ;;  %s736_s14 = smov (!%p610_p12), 127  }
  0x3a   : > { %v366_v29 = vsel %vm349_vm1, %v352_v18, 0.0  ;;  %v362_v30 = vadd.f32 %v361_v25, %v360_v24  ;;  %v363_v31 = vsel %vm349_vm1, %v357_v21, 0.0  ;;  %v378_v32 = vsel %vm349_vm1, %v345_v17, 0.0  ;;  %v428_v25 = vld [vmem:[%s838_s9] sm:$0xff] (!%p610_p12) }
  0x3b   : > { %367 = vadd.xlane.f32.xlu0 %v366_v29  ;;  %v369_v33 = vsel %vm349_vm1, %v355_v26, 0.0  ;;  %v364_v34 = vsel %vm349_vm1, %v359_v27, 0.0  ;;  %v379_v35 = vsel %vm349_vm1, %v347_v22, 0.0  ;;  %v381_v36 = vsel %vm349_vm1, %v346_v23, 0.0 }
  0x3c   : > { %v372_v37 = vsel %vm349_vm1, %v362_v30, 0.0  ;;  %v365_v38 = vadd.f32 %v364_v34, %v363_v31  ;;  %v380_v39 = vadd.f32 %v379_v35, %v378_v32  ;;  %v382_v40 = vsel %vm349_vm1, %v348_v28, 0.0 }
  0x3d   : > { %373 = vadd.xlane.f32.xlu1 %v372_v37  ;;  %v384_v41 = vmul.f32 %v345_v17, %v345_v17  ;;  %v386_v42 = vmul.f32 %v347_v22, %v347_v22  ;;  %v385_v43 = vmul.f32 %v346_v23, %v346_v23  ;;  %v383_v45 = vadd.f32 %v382_v40, %v381_v36 }
  0x3e   : > { %v375_v44 = vsel %vm349_vm1, %v365_v38, 0.0  ;;  %v387_v46 = vmul.f32 %v348_v28, %v348_v28  ;;  %v394_v50 = vsel %vm349_vm1, %v380_v39, 0.0  ;;  %vm414_vm4 = vcmask 23552   ;;  %v429_v28 = vld [vmem:[%s838_s9 + $0x8] sm:$0xff] (!%p610_p12) }
  0x3f   : > { %370 = vadd.xlane.f32.xlu0 %v369_v33  ;;  %v388_v47 = vsel %vm349_vm1, %v384_v41, 0.0  ;;  %v389_v48 = vsel %vm349_vm1, %v386_v42, 0.0  ;;  %v391_v49 = vsel %vm349_vm1, %v385_v43, 0.0  ;;  %v397_v53 = vsel %vm349_vm1, %v383_v45, 0.0 }
  0x40   : > { %v390_v51 = vadd.f32 %v389_v48, %v388_v47  ;;  %v392_v52 = vsel %vm349_vm1, %v387_v46, 0.0  ;;  %vm419_vm5 = vcmask 31744  }
  0x41   : > { %376 = vadd.xlane.f32.xlu1 %v375_v44  ;;  %v393_v54 = vadd.f32 %v392_v52, %v391_v49 }
  0x42   : > { %v400_v55 = vsel %vm349_vm1, %v390_v51, 0.0 }
  0x43   : > { %395 = vadd.xlane.f32.xlu0 %v394_v50  ;;  %v403_v56 = vsel %vm349_vm1, %v393_v54, 0.0 }
  0x45   : > { %398 = vadd.xlane.f32.xlu1 %v397_v53 }
  0x47   : > { %401 = vadd.xlane.f32.xlu0 %v400_v55 }
  0x49   : > { %404 = vadd.xlane.f32.xlu1 %v403_v56 }
  0xc8   : > { %v368_v57 = vpop.xlane.xlu0 %367 }
  0xca   : > { %v374_v58 = vpop.xlane.xlu1 %373 }
  0xcb   : > { %v409_v63 = vsel %vm408_vm2, %v368_v57, %v374_v58 }
  0xcc   : > { %v371_v59 = vpop.xlane.xlu0 %370 }
  0xce   : > { %v377_v60 = vpop.xlane.xlu1 %376 }
  0xcf   : > { %v410_v3 = vsel %vm408_vm2, %v371_v59, %v377_v60 }
  0xd0   : > { %v396_v61 = vpop.xlane.xlu0 %395 }
  0xd1   : > { %v412_v1 = vsel %vm411_vm3, %v409_v63, %v396_v61 }
  0xd2   : > { %v399_v62 = vpop.xlane.xlu1 %398 }
  0xd3   : > { %v413_v6 = vsel %vm411_vm3, %v410_v3, %v399_v62 }
  0xd4   : > { %v402_v2 = vpop.xlane.xlu0 %401  ;;  %425 = sbr.rel (%p610_p12) target bundleno = 602 (0x25a), region = 116 }
  0xd5   : > { %v415_v4 = vsel %vm414_vm4, %v412_v1, %v402_v2 }
  0xd6   : > { %v417_v7 = vadd.f32 %v415_v4, %v406_v0  ;;  %v405_v8 = vpop.xlane.xlu1 %404 }
  0xd7   : > { %v416_v9 = vsel %vm414_vm4, %v413_v6, %v405_v8 }
  0xd8   : > { %420 = vst.msk [vmem:[#allocation2] sm:$0xff] %vm419_vm5, %v417_v7  ;;  %v418_v10 = vadd.f32 %v416_v9, %v407_v5 }
  0xda   : > { %421 = vst.msk [vmem:[#allocation2 + $0x8] sm:$0xff] %vm419_vm5, %v418_v10 }
  0xdf   : > { %v426_v11 = vld [vmem:[#allocation2] sm:$0xff] }
  0xe0   : > { %v430_v13 = vmul.f32 0.0078125, %v426_v11 }
  0xe1   : > { %v427_v12 = vld [vmem:[#allocation2 + $0x8] sm:$0xff] }
  0xe2   : > { %v431_v14 = vmul.f32 0.0078125, %v427_v12  ;;  %v432_v15 = vmul.f32 %v430_v13, %v430_v13 }
  0xe4   : > { %436 = vrot.lane.b32.xlu0 %v432_v15, %s735_s12  ;;  %v433_v16 = vmul.f32 %v431_v14, %v431_v14 }
  0xe8   : > { %438 = vrot.lane.b32.xlu0 %v433_v16, %s735_s12 }
 0x156   : > { %v437_v17 = vpop.permute.xlu0 %436 }
 0x157   : > { %v442_v18 = vsub.f32 %v430_v13, %v437_v17 }
 0x159   : > { %v444_v19 = vadd.f32 1e-05, %v442_v18 }
 0x15a   : > { %v439_v20 = vpop.permute.xlu0 %438 }
 0x15b   : > { %674 = vrsqrt.f32 %v444_v19  ;;  %v443_v21 = vsub.f32 %v431_v14, %v439_v20 }
 0x15d   : > { %v445_v22 = vadd.f32 1e-05, %v443_v21 }
 0x15f   : > { %676 = vrsqrt.f32 %v445_v22 }
 0x165   : > { %v675_v23 = vpop.eup %674 }
 0x166   : > { %450 = vrot.lane.b32.xlu1 %v675_v23, %s736_s14 }
 0x169   : > { %v677_v24 = vpop.eup %676 }
 0x16a   : > { %452 = vrot.lane.b32.xlu1 %v677_v24, %s736_s14 }
 0x1d8   : > { %v451_v26 = vpop.permute.xlu1 %450 }
 0x1d9   : > { %v456_v27 = vmul.f32 %v451_v26, %v428_v25 }
 0x1db   : > { %v458_v29 = vmul.f32 %v456_v27, %v430_v13 }
 0x1dc   : > { %v453_v30 = vpop.permute.xlu1 %452 }
 0x1dd   : > { %v457_v31 = vmul.f32 %v453_v30, %v429_v28  ;;  %462 = vrot.lane.b32.xlu0 %v458_v29, %s735_s12 }
 0x1df   : > { %v459_v32 = vmul.f32 %v457_v31, %v431_v14 }
 0x1e1   : > { %464 = vrot.lane.b32.xlu1 %v459_v32, %s735_s12 }
 0x24f   : > { %v463_v33 = vpop.permute.xlu0 %462 }
 0x250   : > { %v468_v34 = vsub.f32 %v428_v25, %v463_v33 }
 0x252   : > { %v470_v35 = vsel %vm408_vm2, %v456_v27, %v468_v34 }
 0x253   : > { %v472_v36 = vsel %vm411_vm3, %v470_v35, %v456_v27  ;;  %v465_v37 = vpop.permute.xlu1 %464 }
 0x254   : > { %v474_v38 = vsel %vm414_vm4, %v472_v36, %v468_v34  ;;  %v469_v39 = vsub.f32 %v429_v28, %v465_v37 }
 0x255   : > { %476 = vst.msk [vmem:[%s843_s22] sm:$0xff] %vm419_vm5, %v474_v38 }
 0x256   : > { %v471_v40 = vsel %vm408_vm2, %v457_v31, %v469_v39 }
 0x257   : > { %v473_v41 = vsel %vm411_vm3, %v471_v40, %v457_v31 }
 0x258   : > { %v475_v42 = vsel %vm414_vm4, %v473_v41, %v469_v39 }
 0x259   : > { %477 = vst.msk [vmem:[%s843_s22 + $0x8] sm:$0xff] %vm419_vm5, %v475_v42 }
 0x25a PF: > { %s13_s18 = sadd.s32 1, %s732_s18   ;;  %s917_s12 = smov %s712_s13 }
 0x25b   : > { %p10_p13 = scmp.ge.s32.totalorder %s13_s18, 10   ;;  %s918_s13 = smov %s812_s26 }
 0x25c   : > { %s919_s14 = smov %s724_s16  ;;  %s920_s15 = smov %s728_s17 }
 0x25d   : > { %s921_s16 = smov %s924_s19  ;;  %s922_s17 = smov %s928_s20 }
 0x25e   :  { %12 = sbr.rel (!%p10_p13) target bundleno = 4 (0x4), region = 162 }

</bundles_post_ra>
